<compile_context>
chip_gen: v7x
topology: tpu7x:2x2x1
jax: 0.10.0
libtpu: 0.0.40
codegen_flags: <defaults>
</compile_context>

<pallas_src>
import jax
import jax.numpy as jnp
from jax.experimental import pallas as pl
from jax.experimental.pallas import tpu as pltpu


def _round_up(x, m):
    return (x + m - 1) // m * m


def _pad_to(a, shape):
    pads = [(0, t - s) for s, t in zip(a.shape, shape)]
    if all(p == (0, 0) for p in pads):
        return a
    return jnp.pad(a, pads)


def _vnet_kernel(x_ref, w1_ref, b1_ref, w2_ref, b2_ref, w3_ref, b3_ref, o_ref):
    # x arrives f32; cast to bf16 on the VPU right before the MXU dot.
    x = x_ref[...].astype(w1_ref.dtype)
    h = jnp.dot(x, w1_ref[...], preferred_element_type=jnp.float32)
    h = jnp.maximum(h + b1_ref[...], 0.0)
    h = jnp.dot(h.astype(w2_ref.dtype), w2_ref[...],
                preferred_element_type=jnp.float32)
    h = jnp.maximum(h + b2_ref[...], 0.0)
    # Layer 3 (out_features == 1): VPU multiply + XLU lane-reduce; b3 is an
    # SMEM scalar broadcast on the add.
    v = jnp.sum(h * w3_ref[...], axis=-1, keepdims=True) + b3_ref[0, 0]
    o_ref[...] = v.astype(o_ref.dtype)


def prepare_vnet_params(params, *, feature_align=128, use_bf16=True):
    """Pad + cast the weights ONCE.  Cache the returned tuple and reuse it for
    every vnet_forward call; do NOT re-run this in a hot loop."""
    w1, b1, w2, b2, w3, b3 = params
    state_dim, h0 = w1.shape
    h1 = w2.shape[1]

    sp = _round_up(state_dim, feature_align)
    h0p = _round_up(h0, feature_align)
    h1p = _round_up(h1, feature_align)
    mm_dtype = jnp.bfloat16 if use_bf16 else jnp.float32

    # Zero padding is exact: padded hidden units get zero weight & bias, so
    # they contribute nothing downstream.
    w1_p = _pad_to(w1, (sp, h0p)).astype(mm_dtype)
    b1_p = _pad_to(b1.reshape(1, h0), (1, h0p)).astype(jnp.float32)
    w2_p = _pad_to(w2, (h0p, h1p)).astype(mm_dtype)
    b2_p = _pad_to(b2.reshape(1, h1), (1, h1p)).astype(jnp.float32)
    w3_row = _pad_to(w3.reshape(1, h1), (1, h1p)).astype(jnp.float32)  # VPU, f32
    b3_p = b3.reshape(1, 1).astype(jnp.float32)

    prepared = (w1_p, b1_p, w2_p, b2_p, w3_row, b3_p)
    meta = {"state_dim": state_dim, "sp": sp, "h0p": h0p, "h1p": h1p}
    return prepared, meta


def _pick_batch_tile(B):
    # Largest tile (<= 1024) that still leaves >= 2 grid steps, so both v7x
    # TensorCores get work; falls back to 128 for small batches.
    for t in (1024, 512, 256, 128):
        if B >= 2 * t:
            return t
    return 128


def vnet_forward(state, prepared_params, meta, *, batch_tile=None):
    """state: (B, state_dim) f32 -> (B, 1) f32 value estimates."""
    w1_p, b1_p, w2_p, b2_p, w3_row, b3_p = prepared_params
    B, state_dim = state.shape
    assert state_dim == meta["state_dim"], (state_dim, meta["state_dim"])
    sp, h0p, h1p = meta["sp"], meta["h0p"], meta["h1p"]

    if batch_tile is None:
        batch_tile = _pick_batch_tile(B)
    bp = _round_up(B, batch_tile)

    # x stays f32; only zero-padded (a no-op when B / state_dim are aligned).
    # Padded batch rows produce garbage values that are sliced off below; do
    # not reduce over the padded output.
    x_p = _pad_to(state, (bp, sp))

    grid = (bp // batch_tile,)

    in_specs = [
        pl.BlockSpec((batch_tile, sp), lambda i: (i, 0)),  # x tile (f32)
        pl.BlockSpec((sp, h0p), lambda i: (0, 0)),         # W1 (grid-invariant)
        pl.BlockSpec((1, h0p), lambda i: (0, 0)),          # b1
        pl.BlockSpec((h0p, h1p), lambda i: (0, 0)),        # W2
        pl.BlockSpec((1, h1p), lambda i: (0, 0)),          # b2
        pl.BlockSpec((1, h1p), lambda i: (0, 0)),          # w3 as a row (f32)
        pl.BlockSpec(memory_space=pltpu.MemorySpace.SMEM), # b3 scalar
    ]
    out_specs = pl.BlockSpec((batch_tile, 1), lambda i: (i, 0))

    flops = 2 * bp * (sp * h0p + h0p * h1p + h1p)
    bytes_accessed = (
        x_p.size * x_p.dtype.itemsize
        + bp * 4
        + sum(int(a.size) * a.dtype.itemsize
              for a in (w1_p, b1_p, w2_p, b2_p, w3_row, b3_p)))

    out = pl.pallas_call(
        _vnet_kernel,
        out_shape=jax.ShapeDtypeStruct((bp, 1), jnp.float32),
        grid_spec=pl.GridSpec(grid=grid, in_specs=in_specs,
                              out_specs=out_specs),
        compiler_params=pltpu.CompilerParams(
            dimension_semantics=("parallel",),
        ),
        cost_estimate=pl.CostEstimate(
            flops=flops, transcendentals=0, bytes_accessed=bytes_accessed),
    )(x_p, w1_p, b1_p, w2_p, b2_p, w3_row, b3_p)

    return out[:B]


def init_vnet_params(key, state_dim, hidden_sizes=(32, 32)):
    """PyTorch nn.Linear-style init: U(-1/sqrt(fan_in), 1/sqrt(fan_in)).
    Weights stored as (in, out) so the kernel computes x @ W + b."""
    h0, h1 = hidden_sizes
    keys = jax.random.split(key, 6)

    def lin(kw, kb, fan_in, fan_out):
        bound = 1.0 / jnp.sqrt(jnp.float32(fan_in))
        w = jax.random.uniform(kw, (fan_in, fan_out), jnp.float32, -bound, bound)
        b = jax.random.uniform(kb, (1, fan_out), jnp.float32, -bound, bound)
        return w, b

    w1, b1 = lin(keys[0], keys[1], state_dim, h0)
    w2, b2 = lin(keys[2], keys[3], h0, h1)
    w3, b3 = lin(keys[4], keys[5], h1, 1)
    return (w1, b1, w2, b2, w3, b3)


def vnet_reference(state, params):
    """Pure-JAX f32 reference matching PyTorch semantics."""
    w1, b1, w2, b2, w3, b3 = params
    v = jnp.maximum(state @ w1 + b1, 0.0)
    v = jnp.maximum(v @ w2 + b2, 0.0)
    return v @ w3 + b3


def vnet_reference_bf16(state, params):
    """Reference applying the same bf16 operand rounding as the kernel.
    Note: bf16 MXU operands intentionally deviate slightly from PyTorch f32
    semantics; drift grows with fan-in (e.g. the real [400, 300] config)."""
    w1, b1, w2, b2, w3, b3 = params
    bf = lambda a: a.astype(jnp.bfloat16)
    h = jnp.maximum(
        jnp.dot(bf(state), bf(w1), preferred_element_type=jnp.float32) + b1, 0.0)
    h = jnp.maximum(
        jnp.dot(bf(h), bf(w2), preferred_element_type=jnp.float32) + b2, 0.0)
    return jnp.sum(h * w3.reshape(1, -1), axis=-1, keepdims=True) + b3


if __name__ == "__main__":
    key = jax.random.PRNGKey(0)
    k_params, k_state1, k_state2 = jax.random.split(key, 3)

    state_dim = 16
    hidden_sizes = (32, 32)   # small synthetic stand-in for the [400, 300] default

    params = init_vnet_params(k_params, state_dim, hidden_sizes)
    # Pad/cast the weights exactly once; reuse across calls.
    prepared, meta = prepare_vnet_params(params)
    prepared = jax.block_until_ready(prepared)

    # Case 1: small batch (single grid step).
    B1 = 16
    state1 = jax.random.normal(k_state1, (B1, state_dim), jnp.float32)
    out1 = jax.block_until_ready(vnet_forward(state1, prepared, meta))
    assert out1.shape == (B1, 1), out1.shape
    ref1_bf16 = vnet_reference_bf16(state1, params)
    assert jnp.allclose(out1, ref1_bf16, atol=1e-4, rtol=1e-4), \
        float(jnp.max(jnp.abs(out1 - ref1_bf16)))
    ref1_f32 = vnet_reference(state1, params)
    assert jnp.allclose(out1, ref1_f32, atol=5e-2), \
        float(jnp.max(jnp.abs(out1 - ref1_f32)))

    # Case 2: larger, unaligned batch -> multi-step grid + padded rows sliced off.
    B2 = 300
    state2 = jax.random.normal(k_state2, (B2, state_dim), jnp.float32)
    out2 = jax.block_until_ready(vnet_forward(state2, prepared, meta))
    assert out2.shape == (B2, 1), out2.shape
    ref2_bf16 = vnet_reference_bf16(state2, params)
    assert jnp.allclose(out2, ref2_bf16, atol=1e-4, rtol=1e-4), \
        float(jnp.max(jnp.abs(out2 - ref2_bf16)))

    print("KERNEL_OK")
</pallas_src>

<mosaic_0001>
module attributes {stable_mosaic.version = 11 : i64} {
  func.func @_vnet_kernel(%arg0: i32, %arg1: memref<128x128xf32, #tpu.memory_space<vmem>>, %arg2: memref<128x128xbf16, #tpu.memory_space<vmem>>, %arg3: memref<1x128xf32, #tpu.memory_space<vmem>>, %arg4: memref<128x128xbf16, #tpu.memory_space<vmem>>, %arg5: memref<1x128xf32, #tpu.memory_space<vmem>>, %arg6: memref<1x128xf32, #tpu.memory_space<vmem>>, %arg7: memref<1x1xf32, #tpu.memory_space<smem>>, %arg8: memref<128x1xf32, #tpu.memory_space<vmem>>) attributes {dimension_semantics = [#tpu.dimension_semantics<parallel>], iteration_bounds = array<i64: 1>, scalar_prefetch = 0 : i64, scratch_operands = 0 : i64, tpu.core_type = #tpu.core_type<tc>, window_params = [{transform_indices = @transform_0, window_bounds = array<i64: 128, 128>}, {pipeline_mode = #tpu.pipeline_mode<synchronous>, transform_indices = @transform_1, window_bounds = array<i64: 128, 128>}, {pipeline_mode = #tpu.pipeline_mode<synchronous>, transform_indices = @transform_2, window_bounds = array<i64: 1, 128>}, {pipeline_mode = #tpu.pipeline_mode<synchronous>, transform_indices = @transform_3, window_bounds = array<i64: 128, 128>}, {pipeline_mode = #tpu.pipeline_mode<synchronous>, transform_indices = @transform_4, window_bounds = array<i64: 1, 128>}, {pipeline_mode = #tpu.pipeline_mode<synchronous>, transform_indices = @transform_5, window_bounds = array<i64: 1, 128>}, {transform_indices = @transform_6, window_bounds = array<i64: 1, 1>}, {transform_indices = @transform_7, window_bounds = array<i64: 128, 1>}]} {
    %c0 = arith.constant 0 : index
    %c0_0 = arith.constant 0 : index
    %0 = vector.load %arg1[%c0, %c0_0] : memref<128x128xf32, #tpu.memory_space<vmem>>, vector<128x128xf32>
    %1 = arith.truncf %0 : vector<128x128xf32> to vector<128x128xbf16>
    %c0_1 = arith.constant 0 : index
    %c0_2 = arith.constant 0 : index
    %2 = vector.load %arg2[%c0_1, %c0_2] : memref<128x128xbf16, #tpu.memory_space<vmem>>, vector<128x128xbf16>
    %cst = arith.constant dense<0.000000e+00> : vector<128x128xf32>
    %3 = tpu.matmul %1, %2, %cst {dimension_numbers = #tpu.dot_dimension_numbers<[1], [0], [0], [1], [0, 0, 1, 1], [], []>} : vector<128x128xbf16>, vector<128x128xbf16>, vector<128x128xf32> -> vector<128x128xf32>
    %c0_3 = arith.constant 0 : index
    %c0_4 = arith.constant 0 : index
    %4 = vector.load %arg3[%c0_3, %c0_4] : memref<1x128xf32, #tpu.memory_space<vmem>>, vector<1x128xf32>
    %5 = vector.broadcast %4 : vector<1x128xf32> to vector<128x128xf32>
    %6 = arith.addf %3, %5 : vector<128x128xf32>
    %cst_5 = arith.constant 0.000000e+00 : f32
    %7 = vector.broadcast %cst_5 : f32 to vector<128x128xf32>
    %8 = arith.maximumf %6, %7 : vector<128x128xf32>
    %9 = arith.truncf %8 : vector<128x128xf32> to vector<128x128xbf16>
    %c0_6 = arith.constant 0 : index
    %c0_7 = arith.constant 0 : index
    %10 = vector.load %arg4[%c0_6, %c0_7] : memref<128x128xbf16, #tpu.memory_space<vmem>>, vector<128x128xbf16>
    %cst_8 = arith.constant dense<0.000000e+00> : vector<128x128xf32>
    %11 = tpu.matmul %9, %10, %cst_8 {dimension_numbers = #tpu.dot_dimension_numbers<[1], [0], [0], [1], [0, 0, 1, 1], [], []>} : vector<128x128xbf16>, vector<128x128xbf16>, vector<128x128xf32> -> vector<128x128xf32>
    %c0_9 = arith.constant 0 : index
    %c0_10 = arith.constant 0 : index
    %12 = vector.load %arg5[%c0_9, %c0_10] : memref<1x128xf32, #tpu.memory_space<vmem>>, vector<1x128xf32>
    %13 = vector.broadcast %12 : vector<1x128xf32> to vector<128x128xf32>
    %14 = arith.addf %11, %13 : vector<128x128xf32>
    %cst_11 = arith.constant 0.000000e+00 : f32
    %15 = vector.broadcast %cst_11 : f32 to vector<128x128xf32>
    %16 = arith.maximumf %14, %15 : vector<128x128xf32>
    %c0_12 = arith.constant 0 : index
    %c0_13 = arith.constant 0 : index
    %17 = vector.load %arg6[%c0_12, %c0_13] : memref<1x128xf32, #tpu.memory_space<vmem>>, vector<1x128xf32>
    %18 = vector.broadcast %17 : vector<1x128xf32> to vector<128x128xf32>
    %19 = arith.mulf %16, %18 : vector<128x128xf32>
    %cst_14 = arith.constant dense<0.000000e+00> : vector<128xf32>
    %20 = vector.multi_reduction <add>, %19, %cst_14 [1] : vector<128x128xf32> to vector<128xf32>
    %21 = vector.shape_cast %20 : vector<128xf32> to vector<128x1xf32>
    %c0_15 = arith.constant 0 : index
    %c0_16 = arith.constant 0 : index
    %22 = memref.load %arg7[%c0_15, %c0_16] : memref<1x1xf32, #tpu.memory_space<smem>>
    %23 = vector.broadcast %22 : f32 to vector<128x1xf32>
    %24 = arith.addf %21, %23 : vector<128x1xf32>
    %c0_17 = arith.constant 0 : index
    %c0_18 = arith.constant 0 : index
    %25 = vector.load %arg8[%c0_17, %c0_18] : memref<128x1xf32, #tpu.memory_space<vmem>>, vector<128x1xf32>
    tpu.vector_store %arg8[%c0_17, %c0_18], %24 {strides = array<i32>} : memref<128x1xf32, #tpu.memory_space<vmem>>, vector<128x1xf32>,
    return
  }
  func.func @transform_0(%arg0: i32) -> (i32, i32) {
    %c0_i32 = arith.constant 0 : i32
    %c0_i32_0 = arith.constant 0 : i32
    return %arg0, %c0_i32 : i32, i32
  }
  func.func @transform_1(%arg0: i32) -> (i32, i32) {
    %c0_i32 = arith.constant 0 : i32
    %c0_i32_0 = arith.constant 0 : i32
    %c0_i32_1 = arith.constant 0 : i32
    return %c0_i32, %c0_i32_0 : i32, i32
  }
  func.func @transform_2(%arg0: i32) -> (i32, i32) {
    %c0_i32 = arith.constant 0 : i32
    %c0_i32_0 = arith.constant 0 : i32
    %c0_i32_1 = arith.constant 0 : i32
    return %c0_i32, %c0_i32_0 : i32, i32
  }
  func.func @transform_3(%arg0: i32) -> (i32, i32) {
    %c0_i32 = arith.constant 0 : i32
    %c0_i32_0 = arith.constant 0 : i32
    %c0_i32_1 = arith.constant 0 : i32
    return %c0_i32, %c0_i32_0 : i32, i32
  }
  func.func @transform_4(%arg0: i32) -> (i32, i32) {
    %c0_i32 = arith.constant 0 : i32
    %c0_i32_0 = arith.constant 0 : i32
    %c0_i32_1 = arith.constant 0 : i32
    return %c0_i32, %c0_i32_0 : i32, i32
  }
  func.func @transform_5(%arg0: i32) -> (i32, i32) {
    %c0_i32 = arith.constant 0 : i32
    %c0_i32_0 = arith.constant 0 : i32
    %c0_i32_1 = arith.constant 0 : i32
    return %c0_i32, %c0_i32_0 : i32, i32
  }
  func.func @transform_6(%arg0: i32) -> (i32, i32) {
    %c0_i32 = arith.constant 0 : i32
    %c0_i32_0 = arith.constant 0 : i32
    %c0_i32_1 = arith.constant 0 : i32
    return %c0_i32, %c0_i32_0 : i32, i32
  }
  func.func @transform_7(%arg0: i32) -> (i32, i32) {
    %c0_i32 = arith.constant 0 : i32
    %c0_i32_0 = arith.constant 0 : i32
    return %arg0, %c0_i32 : i32, i32
  }
}

</mosaic_0001>

<bundles_post_ra>
// kernel: tpu_custom_call.1
= control target key start
LH: loop header
LB: loop body
LE: loop exit
PB: predicated region body
PF: predicated region fallthrough
CT: control target
= control target key end

     0   :  { %13 = vsyncpa [#allocation4], 0  ;;  %s974_s0 = inlined_call_operand.hbm [shape: f32[128,128], index: 0, kind: input, shape index: {}]   ;;  %s975_s1 = inlined_call_operand.hbm [shape: bf16[128,128], index: 1, kind: input, shape index: {}]   ;;  %s976_s2 = inlined_call_operand.vmem [shape: f32[1,128], index: 2, kind: input, shape index: {}]   ;;  %s977_s3 = inlined_call_operand.hbm [shape: bf16[128,128], index: 3, kind: input, shape index: {}]   ;;  %s978_s4 = inlined_call_operand.vmem [shape: f32[1,128], index: 4, kind: input, shape index: {}]   ;;  %s979_s5 = inlined_call_operand.vmem [shape: f32[1,128], index: 5, kind: input, shape index: {}]   ;;  %s980_s6 = inlined_call_operand.<no memory space> [shape: f32[1,1], index: 6, kind: input, shape index: {}]   ;;  %s981_s7 = inlined_call_operand.vmem [shape: f32[128,1], index: 7, kind: output, shape index: {}]  }
   0x1   :  { %14 = vsyncpa [#allocation6], 0  ;;  %s773_s24 = smov [#allocation5]   ;;  %s703_s28 = scalar_lea.hbm %s975_s1, 1024 }
   0x2   :  { %s32_s25 = sshll.u32 %s773_s24, 4  ;;  %p704_p0 = scmp.ne.s32.totalorder %s975_s1, %s703_s28  ;;  %s33_s25 = int_to_ptr.vmem [resolvable:$true] %s32_s25 }
   0x3   :  { %p707_p1 = scmp.lt.u32.totalorder %s703_s28, %s975_s1 }
   0x5   :  { %p709_p2 = pnand %p707_p1, %p704_p0 }
   0x7   :  { %712 = shalt.err (!%p709_p2)
}
   0x8   :  { %s713_s10 = scalar_lea.vmem %s33_s25, 1024  ;;  %p718_p4 = scmp.lt.s32.totalorder %s33_s25, %s33_s25 }
   0x9   :  { %p714_p3 = scmp.ne.s32.totalorder %s33_s25, %s713_s10  ;;  %p719_p5 = scmp.lt.s32.totalorder %s713_s10, %s713_s10 }
   0xb   :  { %p720_p6 = por %p719_p5, %p718_p4 }
   0xd   :  { %p721_p7 = pnand %p720_p6, %p714_p3 }
   0xf   :  { %724 = shalt.err (!%p721_p7)
}
  0x10   :  { %s774_s11 = smov 64   ;;  %s775_s12 = smov 4  }
  0x11   :  { %38 = dma.hbm_to_vmem [thread:$0]  %s975_s1, 1024, %s33_s25, [#allocation6], %s774_s11, %s774_s11, %s775_s12  }
  0x12   :  { %s776_s15 = smov [#allocation3]   ;;  %s725_s19 = scalar_lea.hbm %s974_s0, 2048 }
  0x13   :  { %s20_s16 = sshll.u32 %s776_s15, 4  ;;  %p726_p8 = scmp.ne.s32.totalorder %s974_s0, %s725_s19  ;;  %s21_s16 = int_to_ptr.vmem [resolvable:$true] %s20_s16 }
  0x14   :  { %p729_p9 = scmp.lt.u32.totalorder %s725_s19, %s974_s0 }
  0x16   :  { %p731_p10 = pnand %p729_p9, %p726_p8 }
  0x18   :  { %734 = shalt.err (!%p731_p10)
}
  0x19   :  { %s735_s24 = scalar_lea.vmem %s21_s16, 2048  ;;  %p740_p12 = scmp.lt.s32.totalorder %s21_s16, %s21_s16 }
  0x1a   :  { %p736_p11 = scmp.ne.s32.totalorder %s21_s16, %s735_s24  ;;  %p741_p13 = scmp.lt.s32.totalorder %s735_s24, %s735_s24 }
  0x1c   :  { %p742_p0 = por %p741_p13, %p740_p12 }
  0x1e   :  { %p743_p1 = pnand %p742_p0, %p736_p11 }
  0x20   :  { %746 = shalt.err (!%p743_p1)
}
  0x21   :  { %s777_s1 = smov 128   ;;  %s778_s25 = smov 8  }
  0x22   :  { %26 = dma.hbm_to_vmem [thread:$0]  %s974_s0, 2048, %s21_s16, [#allocation4], %s777_s1, %s777_s1, %s778_s25  }
  0x23   :  { %s779_s28 = smov [#allocation7]   ;;  %s747_s9 = scalar_lea.hbm %s977_s3, 1024 }
  0x24   :  { %s46_s29 = sshll.u32 %s779_s28, 4  ;;  %p748_p2 = scmp.ne.s32.totalorder %s977_s3, %s747_s9  ;;  %s47_s29 = int_to_ptr.vmem [resolvable:$true] %s46_s29 }
  0x25   :  { %p751_p3 = scmp.lt.u32.totalorder %s747_s9, %s977_s3 }
  0x27   :  { %p753_p4 = pnand %p751_p3, %p748_p2 }
  0x29   :  { %756 = shalt.err (!%p753_p4)
}
  0x2a   :  { %s757_s17 = scalar_lea.vmem %s47_s29, 1024  ;;  %p762_p6 = scmp.lt.s32.totalorder %s47_s29, %s47_s29 }
  0x2b   :  { %p758_p5 = scmp.ne.s32.totalorder %s47_s29, %s757_s17  ;;  %p763_p7 = scmp.lt.s32.totalorder %s757_s17, %s757_s17 }
  0x2d   :  { %p764_p8 = por %p763_p7, %p762_p6 }
  0x2f   :  { %p765_p9 = pnand %p764_p8, %p758_p5 }
  0x31   :  { %768 = shalt.err (!%p765_p9)
}
  0x32   :  { %52 = dma.hbm_to_vmem [thread:$0]  %s977_s3, 1024, %s47_s29, [#allocation6], %s774_s11, %s774_s11, %s775_s12  }
  0x33   :  { %769 = dma.done.wait [#allocation4], 2048  }
  0x34   :  { %770 = vsyncadd [#allocation4], 4294965248 }
  0x35   :  { %771 = dma.done.wait [#allocation6], 2048  }
  0x36   :  { %772 = vsyncadd [#allocation6], 4294965248  ;;  %v687_v0 = vld [vmem:[#allocation5] sm:$0xff]   ;;  %v688_v1 = vld [vmem:[#allocation5 + $0x8] sm:$0xff]   ;;  %vm542_vm0 = vcmask 7168  }
  0x37   :  { %616 = vmatprep.subr.bf16.mxu0 %v687_v0  ;;  %v689_v2 = vld [vmem:[#allocation5 + $0x10] sm:$0xff]   ;;  %v690_v3 = vld [vmem:[#allocation5 + $0x18] sm:$0xff]   ;;  %v69_v4 = vld [vmem:[#allocation3] sm:$0xff] }
  0x38   :  { %617 = vmatpush3.bf16.msra.mxu0 %v687_v0  ;;  %v70_v5 = vld [vmem:[#allocation3 + $0x8] sm:$0xff]  ;;  %v691_v7 = vld [vmem:[#allocation5 + $0x20] sm:$0xff]   ;;  %v697_v11 = vld [vmem:[#allocation7 + $0x10] sm:$0xff]  }
  0x39   :  { %618 = vmatprep.subr.bf16.mxu0 %v688_v1  ;;  %v85_v6 = vpack.c.bf16 %v70_v5, %v69_v4  ;;  %v695_v8 = vld [vmem:[#allocation7] sm:$0xff]   ;;  %v696_v9 = vld [vmem:[#allocation7 + $0x8] sm:$0xff]   ;;  %v693_v12 = vld [vmem:[#allocation5 + $0x30] sm:$0xff]  }
  0x3a   :  { %v692_v10 = vld [vmem:[#allocation5 + $0x28] sm:$0xff]   ;;  %648 = vmatprep.subr.bf16.mxu1 %v695_v8  ;;  %v698_v13 = vld [vmem:[#allocation7 + $0x18] sm:$0xff]   ;;  %v699_v15 = vld [vmem:[#allocation7 + $0x20] sm:$0xff]  }
  0x3b   :  { %632 = vmatprep.mubr.bf16.mxu0 %v85_v6  ;;  %649 = vmatpush3.bf16.msra.mxu1 %v695_v8  ;;  %v694_v14 = vld [vmem:[#allocation5 + $0x38] sm:$0xff]   ;;  %v71_v16 = vld [vmem:[#allocation3 + $0x10] sm:$0xff]  ;;  %v73_v18 = vld [vmem:[#allocation3 + $0x20] sm:$0xff] }
  0x3c   :  { %619 = vmatpush3.bf16.msra.mxu0 %v688_v1  ;;  %650 = vmatprep.subr.bf16.mxu1 %v696_v9  ;;  %v72_v17 = vld [vmem:[#allocation3 + $0x18] sm:$0xff]  ;;  %v74_v19 = vld [vmem:[#allocation3 + $0x28] sm:$0xff]  ;;  %v75_v23 = vld [vmem:[#allocation3 + $0x30] sm:$0xff] }
  0x3d   :  { %620 = vmatprep.subr.bf16.mxu0 %v689_v2  ;;  %v86_v20 = vpack.c.bf16 %v72_v17, %v71_v16  ;;  %v700_v21 = vld [vmem:[#allocation7 + $0x28] sm:$0xff]   ;;  %v87_v22 = vpack.c.bf16 %v74_v19, %v73_v18  ;;  %v76_v24 = vld [vmem:[#allocation3 + $0x38] sm:$0xff]  ;;  %v77_v25 = vld [vmem:[#allocation3 + $0x40] sm:$0xff] }
  0x3e   :  { %v78_v26 = vld [vmem:[#allocation3 + $0x48] sm:$0xff]  ;;  %v88_v27 = vpack.c.bf16 %v76_v24, %v75_v23  ;;  %v79_v29 = vld [vmem:[#allocation3 + $0x50] sm:$0xff]  ;;  %v80_v30 = vld [vmem:[#allocation3 + $0x58] sm:$0xff] }
  0x3f   :  { %651 = vmatpush3.bf16.msra.mxu1 %v696_v9  ;;  %v89_v28 = vpack.c.bf16 %v78_v26, %v77_v25  ;;  %v81_v31 = vld [vmem:[#allocation3 + $0x60] sm:$0xff]  ;;  %v82_v32 = vld [vmem:[#allocation3 + $0x68] sm:$0xff]  ;;  %v90_v33 = vpack.c.bf16 %v80_v30, %v79_v29  ;;  %v83_v35 = vld [vmem:[#allocation3 + $0x70] sm:$0xff] }
  0x40   :  { %621 = vmatpush3.bf16.msra.mxu0 %v689_v2  ;;  %652 = vmatprep.subr.bf16.mxu1 %v697_v11  ;;  %v91_v34 = vpack.c.bf16 %v82_v32, %v81_v31  ;;  %v84_v36 = vld [vmem:[#allocation3 + $0x78] sm:$0xff]  ;;  %v701_v38 = vld [vmem:[#allocation7 + $0x30] sm:$0xff]   ;;  %v565_v40 = vld [vmem:[%s976_s2] ss:$0 sm:$0xff] }
  0x41   :  { %622 = vmatprep.subr.bf16.mxu0 %v690_v3  ;;  %v92_v37 = vpack.c.bf16 %v84_v36, %v83_v35  ;;  %v702_v39 = vld [vmem:[#allocation7 + $0x38] sm:$0xff]  }
  0x43   :  { %653 = vmatpush3.bf16.msra.mxu1 %v697_v11 }
  0x44   :  { %623 = vmatpush3.bf16.msra.mxu0 %v690_v3  ;;  %654 = vmatprep.subr.bf16.mxu1 %v698_v13 }
  0x45   :  { %624 = vmatprep.subr.bf16.mxu0 %v691_v7 }
  0x47   :  { %655 = vmatpush3.bf16.msra.mxu1 %v698_v13 }
  0x48   :  { %625 = vmatpush3.bf16.msra.mxu0 %v691_v7  ;;  %656 = vmatprep.subr.bf16.mxu1 %v699_v15 }
  0x49   :  { %626 = vmatprep.subr.bf16.mxu0 %v692_v10 }
  0x4b   :  { %657 = vmatpush3.bf16.msra.mxu1 %v699_v15 }
  0x4c   :  { %627 = vmatpush3.bf16.msra.mxu0 %v692_v10  ;;  %658 = vmatprep.subr.bf16.mxu1 %v700_v21 }
  0x4d   :  { %628 = vmatprep.subr.bf16.mxu0 %v693_v12 }
  0x4f   :  { %659 = vmatpush3.bf16.msra.mxu1 %v700_v21 }
  0x50   :  { %629 = vmatpush3.bf16.msra.mxu0 %v693_v12  ;;  %660 = vmatprep.subr.bf16.mxu1 %v701_v38 }
  0x51   :  { %630 = vmatprep.subr.bf16.mxu0 %v694_v14 }
  0x53   :  { %661 = vmatpush3.bf16.msra.mxu1 %v701_v38 }
  0x54   :  { %631 = vmatpush3.bf16.msra.mxu0 %v694_v14  ;;  %662 = vmatprep.subr.bf16.mxu1 %v702_v39 }
  0x57   :  { %633 = vmatmul.mubr.bf16.vlgmr.msra.gmra.mrb[0].mxu0 %v86_v20  ;;  %663 = vmatpush3.bf16.msra.mxu1 %v702_v39  ;;  %v875_v39 = vld [vmem:[%s979_s5] ss:$0 sm:$0xff] }
  0x58   :  { %636 = vmatprep.mubr.bf16.mxu0 %v87_v22 }
  0x5f   :  { %637 = vmatmul.mubr.bf16.gmra.mrb[4].mxu0 %v88_v27 }
  0x60   :  { %640 = vmatprep.mubr.bf16.mxu0 %v89_v28 }
  0x67   :  { %641 = vmatmul.mubr.bf16.gmra.mrb[8].mxu0 %v90_v33  ;;  %v868_v33 = vld [vmem:[%s978_s4] ss:$0 sm:$0xff] }
  0x68   :  { %644 = vmatprep.mubr.bf16.mxu0 %v91_v34 }
  0x6f   :  { %645 = vmatmul.mubr.bf16.gmra.mrb[12].mxu0 %v92_v37 }
 0x12a   :  { %v634_v41 = vpop.f32.mrb[0].mxu0 }
 0x12b   :  { %v207_v42 = vadd.f32 %v634_v41, %v565_v40  ;;  %v198_v43 = vpop.f32.mrb[1].mxu0 }
 0x12c   :  { %v199_v44 = vadd.f32 %v565_v40, %v198_v43  ;;  %v635_v45 = vpop.f32.mrb[2].mxu0 }
 0x12d   :  { %v210_v46 = vadd.f32 %v635_v45, %v565_v40  ;;  %v201_v47 = vpop.f32.mrb[3].mxu0  ;;  %v263_v49 = vmax.f32 %v207_v42, 0.0 }
 0x12e   :  { %v202_v48 = vadd.f32 %v565_v40, %v201_v47  ;;  %v261_v51 = vmax.f32 %v199_v44, 0.0 }
 0x12f   :  { %v264_v50 = vmax.f32 %v210_v46, 0.0 }
 0x130   :  { %v262_v52 = vmax.f32 %v202_v48, 0.0 }
 0x131   :  { %v278_v53 = vpack.c.bf16 %v264_v50, %v263_v49 }
 0x132   :  { %v638_v54 = vpop.f32.mrb[4].mxu0  ;;  %v277_v55 = vpack.c.bf16 %v262_v52, %v261_v51 }
 0x133   :  { %v223_v56 = vadd.f32 %v638_v54, %v565_v40  ;;  %v214_v57 = vpop.f32.mrb[5].mxu0 }
 0x134   :  { %v215_v58 = vadd.f32 %v565_v40, %v214_v57  ;;  %v639_v59 = vpop.f32.mrb[6].mxu0  ;;  %664 = vmatprep.mubr.bf16.mxu1 %v277_v55 }
 0x135   :  { %v226_v60 = vadd.f32 %v639_v59, %v565_v40  ;;  %v217_v61 = vpop.f32.mrb[7].mxu0  ;;  %665 = vmatmul.mubr.bf16.vlgmr.msra.gmra.mrb[0].mxu1 %v278_v53  ;;  %v267_v63 = vmax.f32 %v223_v56, 0.0 }
 0x136   :  { %v218_v62 = vadd.f32 %v565_v40, %v217_v61  ;;  %v265_v1 = vmax.f32 %v215_v58, 0.0 }
 0x137   :  { %v268_v0 = vmax.f32 %v226_v60, 0.0 }
 0x138   :  { %v266_v2 = vmax.f32 %v218_v62, 0.0 }
 0x139   :  { %v280_v3 = vpack.c.bf16 %v268_v0, %v267_v63 }
 0x13a   :  { %v279_v4 = vpack.c.bf16 %v266_v2, %v265_v1  ;;  %v642_v5 = vpop.f32.mrb[8].mxu0 }
 0x13b   :  { %v239_v6 = vadd.f32 %v642_v5, %v565_v40  ;;  %v230_v7 = vpop.f32.mrb[9].mxu0 }
 0x13c   :  { %v231_v8 = vadd.f32 %v565_v40, %v230_v7  ;;  %v643_v9 = vpop.f32.mrb[10].mxu0  ;;  %668 = vmatprep.mubr.bf16.mxu1 %v279_v4 }
 0x13d   :  { %v242_v10 = vadd.f32 %v643_v9, %v565_v40  ;;  %v233_v11 = vpop.f32.mrb[11].mxu0  ;;  %669 = vmatmul.mubr.bf16.gmra.mrb[4].mxu1 %v280_v3  ;;  %v271_v13 = vmax.f32 %v239_v6, 0.0 }
 0x13e   :  { %v234_v12 = vadd.f32 %v565_v40, %v233_v11  ;;  %v269_v15 = vmax.f32 %v231_v8, 0.0 }
 0x13f   :  { %v272_v14 = vmax.f32 %v242_v10, 0.0 }
 0x140   :  { %v270_v16 = vmax.f32 %v234_v12, 0.0 }
 0x141   :  { %v282_v17 = vpack.c.bf16 %v272_v14, %v271_v13 }
 0x142   :  { %v281_v18 = vpack.c.bf16 %v270_v16, %v269_v15  ;;  %v646_v19 = vpop.f32.mrb[12].mxu0 }
 0x143   :  { %v255_v20 = vadd.f32 %v646_v19, %v565_v40  ;;  %v246_v21 = vpop.f32.mrb[13].mxu0 }
 0x144   :  { %v247_v22 = vadd.f32 %v565_v40, %v246_v21  ;;  %v647_v23 = vpop.f32.mrb[14].mxu0  ;;  %672 = vmatprep.mubr.bf16.mxu1 %v281_v18 }
 0x145   :  { %v258_v24 = vadd.f32 %v647_v23, %v565_v40  ;;  %v249_v25 = vpop.f32.mrb[15].mxu0  ;;  %673 = vmatmul.mubr.bf16.gmra.mrb[8].mxu1 %v282_v17  ;;  %v275_v27 = vmax.f32 %v255_v20, 0.0 }
 0x146   :  { %v250_v26 = vadd.f32 %v565_v40, %v249_v25  ;;  %v273_v29 = vmax.f32 %v247_v22, 0.0 }
 0x147   :  { %v276_v28 = vmax.f32 %v258_v24, 0.0 }
 0x148   :  { %v274_v30 = vmax.f32 %v250_v26, 0.0 }
 0x149   :  { %v284_v31 = vpack.c.bf16 %v276_v28, %v275_v27 }
 0x14a   :  { %v283_v32 = vpack.c.bf16 %v274_v30, %v273_v29 }
 0x14c   :  { %676 = vmatprep.mubr.bf16.mxu1 %v283_v32 }
 0x14d   :  { %677 = vmatmul.mubr.bf16.gmra.mrb[12].mxu1 %v284_v31 }
 0x208   :  { %v666_v34 = vpop.f32.mrb[0].mxu1 }
 0x209   :  { %v399_v35 = vadd.f32 %v666_v34, %v868_v33  ;;  %v390_v36 = vpop.f32.mrb[1].mxu1 }
 0x20a   :  { %v391_v37 = vadd.f32 %v868_v33, %v390_v36  ;;  %v667_v38 = vpop.f32.mrb[2].mxu1 }
 0x20b   :  { %v455_v40 = vmax.f32 %v399_v35, 0.0  ;;  %v402_v41 = vadd.f32 %v667_v38, %v868_v33  ;;  %v393_v42 = vpop.f32.mrb[3].mxu1 }
 0x20c   :  { %v453_v43 = vmax.f32 %v391_v37, 0.0  ;;  %v394_v44 = vadd.f32 %v868_v33, %v393_v42 }
 0x20d   :  { %v456_v45 = vmax.f32 %v402_v41, 0.0  ;;  %v478_v46 = vmul.f32 %v875_v39, %v455_v40 }
 0x20e   :  { %v454_v47 = vmax.f32 %v394_v44, 0.0  ;;  %v476_v48 = vmul.f32 %v875_v39, %v453_v43 }
 0x20f   :  { %496 = vadd.xlane.f32.xlu1 %v478_v46  ;;  %v479_v52 = vmul.f32 %v875_v39, %v456_v45 }
 0x210   :  { %v670_v49 = vpop.f32.mrb[4].mxu1  ;;  %492 = vadd.xlane.f32.xlu0 %v476_v48  ;;  %v477_v55 = vmul.f32 %v875_v39, %v454_v47 }
 0x211   :  { %v415_v50 = vadd.f32 %v670_v49, %v868_v33  ;;  %v406_v51 = vpop.f32.mrb[5].mxu1 }
 0x212   :  { %v407_v53 = vadd.f32 %v868_v33, %v406_v51  ;;  %v671_v54 = vpop.f32.mrb[6].mxu1 }
 0x213   :  { %v459_v56 = vmax.f32 %v415_v50, 0.0  ;;  %v418_v57 = vadd.f32 %v671_v54, %v868_v33  ;;  %498 = vadd.xlane.f32.xlu1 %v479_v52  ;;  %v409_v58 = vpop.f32.mrb[7].mxu1 }
 0x214   :  { %v410_v59 = vadd.f32 %v868_v33, %v409_v58  ;;  %494 = vadd.xlane.f32.xlu0 %v477_v55  ;;  %v457_v62 = vmax.f32 %v407_v53, 0.0 }
 0x215   :  { %v460_v60 = vmax.f32 %v418_v57, 0.0  ;;  %v482_v61 = vmul.f32 %v875_v39, %v459_v56 }
 0x216   :  { %v458_v63 = vmax.f32 %v410_v59, 0.0  ;;  %v480_v6 = vmul.f32 %v875_v39, %v457_v62 }
 0x217   :  { %v483_v0 = vmul.f32 %v875_v39, %v460_v60 }
 0x218   :  { %v674_v1 = vpop.f32.mrb[8].mxu1  ;;  %504 = vadd.xlane.f32.xlu0 %v482_v61  ;;  %v481_v10 = vmul.f32 %v875_v39, %v458_v63 }
 0x219   :  { %v431_v2 = vadd.f32 %v674_v1, %v868_v33  ;;  %506 = vadd.xlane.f32.xlu1 %v483_v0  ;;  %v422_v3 = vpop.f32.mrb[9].mxu1 }
 0x21a   :  { %v423_v4 = vadd.f32 %v868_v33, %v422_v3  ;;  %v675_v5 = vpop.f32.mrb[10].mxu1 }
 0x21b   :  { %v463_v7 = vmax.f32 %v431_v2, 0.0  ;;  %v434_v8 = vadd.f32 %v675_v5, %v868_v33  ;;  %v425_v9 = vpop.f32.mrb[11].mxu1 }
 0x21c   :  { %v426_v11 = vadd.f32 %v868_v33, %v425_v9  ;;  %500 = vadd.xlane.f32.xlu0 %v480_v6  ;;  %v461_v14 = vmax.f32 %v423_v4, 0.0 }
 0x21d   :  { %v464_v12 = vmax.f32 %v434_v8, 0.0  ;;  %502 = vadd.xlane.f32.xlu1 %v481_v10  ;;  %v486_v13 = vmul.f32 %v875_v39, %v463_v7 }
 0x21e   :  { %v462_v15 = vmax.f32 %v426_v11, 0.0  ;;  %v484_v22 = vmul.f32 %v875_v39, %v461_v14 }
 0x21f   :  { %v487_v16 = vmul.f32 %v875_v39, %v464_v12 }
 0x220   :  { %v678_v17 = vpop.f32.mrb[12].mxu1  ;;  %512 = vadd.xlane.f32.xlu0 %v486_v13  ;;  %v485_v24 = vmul.f32 %v875_v39, %v462_v15 }
 0x221   :  { %v438_v18 = vpop.f32.mrb[13].mxu1  ;;  %514 = vadd.xlane.f32.xlu1 %v487_v16  ;;  %v447_v19 = vadd.f32 %v678_v17, %v868_v33 }
 0x222   :  { %v439_v20 = vadd.f32 %v868_v33, %v438_v18  ;;  %v679_v21 = vpop.f32.mrb[14].mxu1 }
 0x223   :  { %v441_v23 = vpop.f32.mrb[15].mxu1  ;;  %v450_v26 = vadd.f32 %v679_v21, %v868_v33  ;;  %v467_v28 = vmax.f32 %v447_v19, 0.0 }
 0x224   :  { %v465_v25 = vmax.f32 %v439_v20, 0.0  ;;  %v442_v27 = vadd.f32 %v868_v33, %v441_v23  ;;  %508 = vadd.xlane.f32.xlu0 %v484_v22  ;;  %v525_v33 = vstv %s980_s6 }
 0x225   :  { %510 = vadd.xlane.f32.xlu1 %v485_v24  ;;  %v468_v31 = vmax.f32 %v450_v26, 0.0  ;;  %v490_v34 = vmul.f32 %v875_v39, %v467_v28 }
 0x226   :  { %v466_v29 = vmax.f32 %v442_v27, 0.0  ;;  %v488_v30 = vmul.f32 %v875_v39, %v465_v25 }
 0x227   :  { %v491_v35 = vmul.f32 %v875_v39, %v468_v31 }
 0x228   :  { %516 = vadd.xlane.f32.xlu0 %v488_v30  ;;  %v489_v32 = vmul.f32 %v875_v39, %v466_v29 }
 0x22a   :  { %518 = vadd.xlane.f32.xlu1 %v489_v32 }
 0x22c   :  { %520 = vadd.xlane.f32.xlu0 %v490_v34 }
 0x22e   :  { %522 = vadd.xlane.f32.xlu1 %v491_v35 }
 0x29c   :  { %v497_v36 = vpop.xlane.xlu1 %496 }
 0x29d   :  { %v528_v37 = vadd.f32 %v525_v33, %v497_v36  ;;  %v493_v38 = vpop.xlane.xlu0 %492 }
 0x29e   :  { %v526_v40 = vadd.f32 %v525_v33, %v493_v38 }
 0x29f   :  { %545 = vst.msk [vmem:[%s981_s7 + $0x10] sm:$0xff] %vm542_vm0, %v528_v37 }
 0x2a0   :  { %543 = vst.msk [vmem:[%s981_s7] sm:$0xff] %vm542_vm0, %v526_v40  ;;  %v499_v39 = vpop.xlane.xlu1 %498 }
 0x2a1   :  { %v529_v41 = vadd.f32 %v525_v33, %v499_v39  ;;  %v495_v42 = vpop.xlane.xlu0 %494 }
 0x2a2   :  { %v527_v43 = vadd.f32 %v525_v33, %v495_v42 }
 0x2a3   :  { %546 = vst.msk [vmem:[%s981_s7 + $0x18] sm:$0xff] %vm542_vm0, %v529_v41 }
 0x2a4   :  { %544 = vst.msk [vmem:[%s981_s7 + $0x8] sm:$0xff] %vm542_vm0, %v527_v43 }
 0x2a5   :  { %v505_v44 = vpop.xlane.xlu0 %504 }
 0x2a6   :  { %v532_v45 = vadd.f32 %v525_v33, %v505_v44  ;;  %v507_v46 = vpop.xlane.xlu1 %506 }
 0x2a7   :  { %v533_v47 = vadd.f32 %v525_v33, %v507_v46 }
 0x2a8   :  { %549 = vst.msk [vmem:[%s981_s7 + $0x30] sm:$0xff] %vm542_vm0, %v532_v45 }
 0x2a9   :  { %550 = vst.msk [vmem:[%s981_s7 + $0x38] sm:$0xff] %vm542_vm0, %v533_v47  ;;  %v501_v48 = vpop.xlane.xlu0 %500 }
 0x2aa   :  { %v530_v49 = vadd.f32 %v525_v33, %v501_v48  ;;  %v503_v50 = vpop.xlane.xlu1 %502 }
 0x2ab   :  { %v531_v51 = vadd.f32 %v525_v33, %v503_v50 }
 0x2ac   :  { %547 = vst.msk [vmem:[%s981_s7 + $0x20] sm:$0xff] %vm542_vm0, %v530_v49 }
 0x2ad   :  { %548 = vst.msk [vmem:[%s981_s7 + $0x28] sm:$0xff] %vm542_vm0, %v531_v51  ;;  %v513_v52 = vpop.xlane.xlu0 %512 }
 0x2ae   :  { %v536_v53 = vadd.f32 %v525_v33, %v513_v52  ;;  %v515_v54 = vpop.xlane.xlu1 %514 }
 0x2af   :  { %v537_v55 = vadd.f32 %v525_v33, %v515_v54 }
 0x2b0   :  { %553 = vst.msk [vmem:[%s981_s7 + $0x50] sm:$0xff] %vm542_vm0, %v536_v53 }
 0x2b1   :  { %554 = vst.msk [vmem:[%s981_s7 + $0x58] sm:$0xff] %vm542_vm0, %v537_v55  ;;  %v509_v56 = vpop.xlane.xlu0 %508 }
 0x2b2   :  { %v534_v57 = vadd.f32 %v525_v33, %v509_v56  ;;  %v511_v58 = vpop.xlane.xlu1 %510 }
 0x2b3   :  { %v535_v59 = vadd.f32 %v525_v33, %v511_v58 }
 0x2b4   :  { %551 = vst.msk [vmem:[%s981_s7 + $0x40] sm:$0xff] %vm542_vm0, %v534_v57 }
 0x2b5   :  { %552 = vst.msk [vmem:[%s981_s7 + $0x48] sm:$0xff] %vm542_vm0, %v535_v59  ;;  %v517_v60 = vpop.xlane.xlu0 %516 }
 0x2b6   :  { %v538_v61 = vadd.f32 %v525_v33, %v517_v60 }
 0x2b7   :  { %v519_v62 = vpop.xlane.xlu1 %518 }
 0x2b8   :  { %555 = vst.msk [vmem:[%s981_s7 + $0x60] sm:$0xff] %vm542_vm0, %v538_v61  ;;  %v539_v63 = vadd.f32 %v525_v33, %v519_v62 }
 0x2b9   :  { %v521_v0 = vpop.xlane.xlu0 %520 }
 0x2ba   :  { %556 = vst.msk [vmem:[%s981_s7 + $0x68] sm:$0xff] %vm542_vm0, %v539_v63  ;;  %v540_v1 = vadd.f32 %v525_v33, %v521_v0 }
 0x2bb   :  { %v523_v2 = vpop.xlane.xlu1 %522 }
 0x2bc   :  { %557 = vst.msk [vmem:[%s981_s7 + $0x70] sm:$0xff] %vm542_vm0, %v540_v1  ;;  %v541_v3 = vadd.f32 %v525_v33, %v523_v2 }
 0x2be   :  { %558 = vst.msk [vmem:[%s981_s7 + $0x78] sm:$0xff] %vm542_vm0, %v541_v3 }
 0x2bf   :  { %563 = vsyncpa [#allocation4], 1 }
 0x2c0   :  { %564 = vsyncpa [#allocation6], 1 }

</bundles_post_ra>
